<compile_context>
chip_gen: v7x
topology: tpu7x:2x2x1
jax: 0.10.0
libtpu: 0.0.40
codegen_flags: <defaults>
</compile_context>

<pallas_src>
import jax
import jax.numpy as jnp
from jax.experimental import pallas as pl
from jax.experimental.pallas import tpu as pltpu


def _round_up(n, m):
    return ((n + m - 1) // m) * m


def _mlp_kernel(x_ref, w1_ref, b1_ref, w2_ref, b2_ref, w3_ref, b3_ref, o_ref):
    x = x_ref[...]          # (TB, F_pad) f32
    w1 = w1_ref[...]        # (F_pad, H)  f32

    # ---- Layer 1: Linear(F -> H) as VPU broadcast-FMA (K is tiny) + ReLU ----
    f_pad = x.shape[1]
    acc = x[:, 0:1] * w1[0:1, :]
    for f in range(1, f_pad):          # static unroll (F_pad == 8)
        acc = acc + x[:, f:f + 1] * w1[f:f + 1, :]
    h1 = jnp.maximum(acc + b1_ref[...], 0.0)
    # (Dropout(0.2) -> identity in eval mode)

    # ---- Layer 2: Linear(H -> H), bf16 MXU operands, f32 accumulate + ReLU ----
    h2 = jnp.dot(h1.astype(jnp.bfloat16),
                 w2_ref[...].astype(jnp.bfloat16),
                 preferred_element_type=jnp.float32)
    h2 = jnp.maximum(h2 + b2_ref[...], 0.0)
    # (Dropout(0.2) -> identity in eval mode)

    # ---- Layer 3: Linear(H -> C_pad), bf16 MXU operands, f32 accumulate ----
    out = jnp.dot(h2.astype(jnp.bfloat16),
                  w3_ref[...].astype(jnp.bfloat16),
                  preferred_element_type=jnp.float32)
    o_ref[...] = (out + b3_ref[...]).astype(o_ref.dtype)


def activity_net_forward(x, params, *, block_b=1024):
    """Fused 3-layer MLP forward. x: (B, input_size) float32."""
    w1, b1, w2, b2, w3, b3 = params        # w: (in, out), b: (1, out)
    B, F = x.shape
    H = w1.shape[1]
    C = w3.shape[1]

    # Lane-friendly padding.
    F_pad = max(8, _round_up(F, 8))        # input features: 3 -> 8
    C_pad = _round_up(C, 128)              # output classes: 6 -> 128 (lane-dense stores)

    # Batch tile: big enough to amortize per-step overhead, small enough that
    # double-buffered x/out tiles fit comfortably in v7x's 64 MiB VMEM.
    TB = min(block_b, _round_up(B, 8))
    B_pad = _round_up(B, TB)

    x_p = jnp.zeros((B_pad, F_pad), jnp.float32).at[:B, :F].set(x)
    w1_p = jnp.zeros((F_pad, H), jnp.float32).at[:F, :].set(w1)
    w3_p = jnp.zeros((H, C_pad), jnp.float32).at[:, :C].set(w3)
    b3_p = jnp.zeros((1, C_pad), jnp.float32).at[:, :C].set(b3)

    grid = (pl.cdiv(B_pad, TB),)

    # Weights/biases: whole-array blocks, constant index_map -> VMEM-resident.
    whole = lambda a: pl.BlockSpec(a.shape, lambda i: (0,) * a.ndim)

    out = pl.pallas_call(
        _mlp_kernel,
        out_shape=jax.ShapeDtypeStruct((B_pad, C_pad), jnp.float32),
        grid=grid,
        in_specs=[
            pl.BlockSpec((TB, F_pad), lambda i: (i, 0)),   # x: batch-tiled
            whole(w1_p), whole(b1),
            whole(w2), whole(b2),
            whole(w3_p), whole(b3_p),
        ],
        out_specs=pl.BlockSpec((TB, C_pad), lambda i: (i, 0)),
        compiler_params=pltpu.CompilerParams(
            dimension_semantics=("parallel",),
            vmem_limit_bytes=16 << 20,
        ),
    )(x_p, w1_p, b1, w2, b2, w3_p, b3_p)

    return out[:B, :C]


def init_params(key, input_size=3, hidden_size=128, num_classes=6):
    """Deterministic init mimicking PyTorch Linear (uniform +-1/sqrt(fan_in)).
    Weights stored as (in_features, out_features)."""
    def linear(k, fan_in, fan_out):
        kw, kb = jax.random.split(k)
        bound = 1.0 / jnp.sqrt(fan_in)
        w = jax.random.uniform(kw, (fan_in, fan_out), jnp.float32, -bound, bound)
        b = jax.random.uniform(kb, (1, fan_out), jnp.float32, -bound, bound)
        return w, b

    k1, k2, k3 = jax.random.split(key, 3)
    w1, b1 = linear(k1, input_size, hidden_size)
    w2, b2 = linear(k2, hidden_size, hidden_size)
    w3, b3 = linear(k3, hidden_size, num_classes)
    return (w1, b1, w2, b2, w3, b3)


def reference_forward_f32(x, params):
    """Plain-JAX f32 reference (matches PyTorch eval-mode forward)."""
    w1, b1, w2, b2, w3, b3 = params
    h = jnp.maximum(x @ w1 + b1, 0.0)
    h = jnp.maximum(h @ w2 + b2, 0.0)
    return h @ w3 + b3


def reference_forward_bf16(x, params):
    """Plain-JAX reference with the same bf16-operand / f32-accum matmuls as
    the kernel (for a tight numerical check)."""
    w1, b1, w2, b2, w3, b3 = params
    h = jnp.maximum(x @ w1 + b1, 0.0)
    h = jnp.maximum(
        jnp.dot(h.astype(jnp.bfloat16), w2.astype(jnp.bfloat16),
                preferred_element_type=jnp.float32) + b2, 0.0)
    return jnp.dot(h.astype(jnp.bfloat16), w3.astype(jnp.bfloat16),
                   preferred_element_type=jnp.float32) + b3


if __name__ == "__main__":
    key = jax.random.PRNGKey(0)
    kp, kx = jax.random.split(key)

    input_size, hidden_size, num_classes = 3, 128, 6
    batch = 16

    params = init_params(kp, input_size, hidden_size, num_classes)
    x = jax.random.normal(kx, (batch, input_size), jnp.float32)

    out = activity_net_forward(x, params)
    out = jax.block_until_ready(out)
    assert out.shape == (batch, num_classes)

    # Tight check against a precision-matched (bf16 matmul, f32 accum) reference.
    ref_bf16 = reference_forward_bf16(x, params)
    assert jnp.allclose(out, ref_bf16, atol=1e-3, rtol=1e-3), \
        "mismatch vs bf16-matched reference"

    # Loose check against the pure-f32 reference (bf16 operands => ~1e-2 error).
    ref_f32 = reference_forward_f32(x, params)
    assert jnp.allclose(out, ref_f32, atol=5e-2, rtol=5e-2), \
        "mismatch vs f32 reference"

    print("KERNEL_OK")
</pallas_src>

<mosaic_0001>
module attributes {stable_mosaic.version = 11 : i64} {
  func.func @_mlp_kernel(%arg0: i32, %arg1: memref<16x8xf32, #tpu.memory_space<vmem>>, %arg2: memref<8x128xf32, #tpu.memory_space<vmem>>, %arg3: memref<1x128xf32, #tpu.memory_space<vmem>>, %arg4: memref<128x128xf32, #tpu.memory_space<vmem>>, %arg5: memref<1x128xf32, #tpu.memory_space<vmem>>, %arg6: memref<128x128xf32, #tpu.memory_space<vmem>>, %arg7: memref<1x128xf32, #tpu.memory_space<vmem>>, %arg8: memref<16x128xf32, #tpu.memory_space<vmem>>) attributes {dimension_semantics = [#tpu.dimension_semantics<parallel>], iteration_bounds = array<i64: 1>, scalar_prefetch = 0 : i64, scratch_operands = 0 : i64, tpu.core_type = #tpu.core_type<tc>, window_params = [{transform_indices = @transform_0, window_bounds = array<i64: 16, 8>}, {pipeline_mode = #tpu.pipeline_mode<synchronous>, transform_indices = @transform_1, window_bounds = array<i64: 8, 128>}, {pipeline_mode = #tpu.pipeline_mode<synchronous>, transform_indices = @transform_2, window_bounds = array<i64: 1, 128>}, {pipeline_mode = #tpu.pipeline_mode<synchronous>, transform_indices = @transform_3, window_bounds = array<i64: 128, 128>}, {pipeline_mode = #tpu.pipeline_mode<synchronous>, transform_indices = @transform_4, window_bounds = array<i64: 1, 128>}, {pipeline_mode = #tpu.pipeline_mode<synchronous>, transform_indices = @transform_5, window_bounds = array<i64: 128, 128>}, {pipeline_mode = #tpu.pipeline_mode<synchronous>, transform_indices = @transform_6, window_bounds = array<i64: 1, 128>}, {transform_indices = @transform_7, window_bounds = array<i64: 16, 128>}]} {
    %c0 = arith.constant 0 : index
    %c0_0 = arith.constant 0 : index
    %0 = vector.load %arg1[%c0, %c0_0] : memref<16x8xf32, #tpu.memory_space<vmem>>, vector<16x8xf32>
    %c0_1 = arith.constant 0 : index
    %c0_2 = arith.constant 0 : index
    %1 = vector.load %arg2[%c0_1, %c0_2] : memref<8x128xf32, #tpu.memory_space<vmem>>, vector<8x128xf32>
    %2 = vector.extract_strided_slice %0 {offsets = [0, 0], sizes = [16, 1], strides = [1, 1]} : vector<16x8xf32> to vector<16x1xf32>
    %3 = vector.extract_strided_slice %1 {offsets = [0, 0], sizes = [1, 128], strides = [1, 1]} : vector<8x128xf32> to vector<1x128xf32>
    %4 = vector.broadcast %2 : vector<16x1xf32> to vector<16x128xf32>
    %5 = vector.broadcast %3 : vector<1x128xf32> to vector<16x128xf32>
    %6 = arith.mulf %4, %5 : vector<16x128xf32>
    %7 = vector.extract_strided_slice %0 {offsets = [0, 1], sizes = [16, 1], strides = [1, 1]} : vector<16x8xf32> to vector<16x1xf32>
    %8 = vector.extract_strided_slice %1 {offsets = [1, 0], sizes = [1, 128], strides = [1, 1]} : vector<8x128xf32> to vector<1x128xf32>
    %9 = vector.broadcast %7 : vector<16x1xf32> to vector<16x128xf32>
    %10 = vector.broadcast %8 : vector<1x128xf32> to vector<16x128xf32>
    %11 = arith.mulf %9, %10 : vector<16x128xf32>
    %12 = arith.addf %6, %11 : vector<16x128xf32>
    %13 = vector.extract_strided_slice %0 {offsets = [0, 2], sizes = [16, 1], strides = [1, 1]} : vector<16x8xf32> to vector<16x1xf32>
    %14 = vector.extract_strided_slice %1 {offsets = [2, 0], sizes = [1, 128], strides = [1, 1]} : vector<8x128xf32> to vector<1x128xf32>
    %15 = vector.broadcast %13 : vector<16x1xf32> to vector<16x128xf32>
    %16 = vector.broadcast %14 : vector<1x128xf32> to vector<16x128xf32>
    %17 = arith.mulf %15, %16 : vector<16x128xf32>
    %18 = arith.addf %12, %17 : vector<16x128xf32>
    %19 = vector.extract_strided_slice %0 {offsets = [0, 3], sizes = [16, 1], strides = [1, 1]} : vector<16x8xf32> to vector<16x1xf32>
    %20 = vector.extract_strided_slice %1 {offsets = [3, 0], sizes = [1, 128], strides = [1, 1]} : vector<8x128xf32> to vector<1x128xf32>
    %21 = vector.broadcast %19 : vector<16x1xf32> to vector<16x128xf32>
    %22 = vector.broadcast %20 : vector<1x128xf32> to vector<16x128xf32>
    %23 = arith.mulf %21, %22 : vector<16x128xf32>
    %24 = arith.addf %18, %23 : vector<16x128xf32>
    %25 = vector.extract_strided_slice %0 {offsets = [0, 4], sizes = [16, 1], strides = [1, 1]} : vector<16x8xf32> to vector<16x1xf32>
    %26 = vector.extract_strided_slice %1 {offsets = [4, 0], sizes = [1, 128], strides = [1, 1]} : vector<8x128xf32> to vector<1x128xf32>
    %27 = vector.broadcast %25 : vector<16x1xf32> to vector<16x128xf32>
    %28 = vector.broadcast %26 : vector<1x128xf32> to vector<16x128xf32>
    %29 = arith.mulf %27, %28 : vector<16x128xf32>
    %30 = arith.addf %24, %29 : vector<16x128xf32>
    %31 = vector.extract_strided_slice %0 {offsets = [0, 5], sizes = [16, 1], strides = [1, 1]} : vector<16x8xf32> to vector<16x1xf32>
    %32 = vector.extract_strided_slice %1 {offsets = [5, 0], sizes = [1, 128], strides = [1, 1]} : vector<8x128xf32> to vector<1x128xf32>
    %33 = vector.broadcast %31 : vector<16x1xf32> to vector<16x128xf32>
    %34 = vector.broadcast %32 : vector<1x128xf32> to vector<16x128xf32>
    %35 = arith.mulf %33, %34 : vector<16x128xf32>
    %36 = arith.addf %30, %35 : vector<16x128xf32>
    %37 = vector.extract_strided_slice %0 {offsets = [0, 6], sizes = [16, 1], strides = [1, 1]} : vector<16x8xf32> to vector<16x1xf32>
    %38 = vector.extract_strided_slice %1 {offsets = [6, 0], sizes = [1, 128], strides = [1, 1]} : vector<8x128xf32> to vector<1x128xf32>
    %39 = vector.broadcast %37 : vector<16x1xf32> to vector<16x128xf32>
    %40 = vector.broadcast %38 : vector<1x128xf32> to vector<16x128xf32>
    %41 = arith.mulf %39, %40 : vector<16x128xf32>
    %42 = arith.addf %36, %41 : vector<16x128xf32>
    %43 = vector.extract_strided_slice %0 {offsets = [0, 7], sizes = [16, 1], strides = [1, 1]} : vector<16x8xf32> to vector<16x1xf32>
    %44 = vector.extract_strided_slice %1 {offsets = [7, 0], sizes = [1, 128], strides = [1, 1]} : vector<8x128xf32> to vector<1x128xf32>
    %45 = vector.broadcast %43 : vector<16x1xf32> to vector<16x128xf32>
    %46 = vector.broadcast %44 : vector<1x128xf32> to vector<16x128xf32>
    %47 = arith.mulf %45, %46 : vector<16x128xf32>
    %48 = arith.addf %42, %47 : vector<16x128xf32>
    %c0_3 = arith.constant 0 : index
    %c0_4 = arith.constant 0 : index
    %49 = vector.load %arg3[%c0_3, %c0_4] : memref<1x128xf32, #tpu.memory_space<vmem>>, vector<1x128xf32>
    %50 = vector.broadcast %49 : vector<1x128xf32> to vector<16x128xf32>
    %51 = arith.addf %48, %50 : vector<16x128xf32>
    %cst = arith.constant 0.000000e+00 : f32
    %52 = vector.broadcast %cst : f32 to vector<16x128xf32>
    %53 = arith.maximumf %51, %52 : vector<16x128xf32>
    %54 = arith.truncf %53 : vector<16x128xf32> to vector<16x128xbf16>
    %c0_5 = arith.constant 0 : index
    %c0_6 = arith.constant 0 : index
    %55 = vector.load %arg4[%c0_5, %c0_6] : memref<128x128xf32, #tpu.memory_space<vmem>>, vector<128x128xf32>
    %56 = arith.truncf %55 : vector<128x128xf32> to vector<128x128xbf16>
    %cst_7 = arith.constant dense<0.000000e+00> : vector<16x128xf32>
    %57 = tpu.matmul %54, %56, %cst_7 {dimension_numbers = #tpu.dot_dimension_numbers<[1], [0], [0], [1], [0, 0, 1, 1], [], []>} : vector<16x128xbf16>, vector<128x128xbf16>, vector<16x128xf32> -> vector<16x128xf32>
    %c0_8 = arith.constant 0 : index
    %c0_9 = arith.constant 0 : index
    %58 = vector.load %arg5[%c0_8, %c0_9] : memref<1x128xf32, #tpu.memory_space<vmem>>, vector<1x128xf32>
    %59 = vector.broadcast %58 : vector<1x128xf32> to vector<16x128xf32>
    %60 = arith.addf %57, %59 : vector<16x128xf32>
    %cst_10 = arith.constant 0.000000e+00 : f32
    %61 = vector.broadcast %cst_10 : f32 to vector<16x128xf32>
    %62 = arith.maximumf %60, %61 : vector<16x128xf32>
    %63 = arith.truncf %62 : vector<16x128xf32> to vector<16x128xbf16>
    %c0_11 = arith.constant 0 : index
    %c0_12 = arith.constant 0 : index
    %64 = vector.load %arg6[%c0_11, %c0_12] : memref<128x128xf32, #tpu.memory_space<vmem>>, vector<128x128xf32>
    %65 = arith.truncf %64 : vector<128x128xf32> to vector<128x128xbf16>
    %cst_13 = arith.constant dense<0.000000e+00> : vector<16x128xf32>
    %66 = tpu.matmul %63, %65, %cst_13 {dimension_numbers = #tpu.dot_dimension_numbers<[1], [0], [0], [1], [0, 0, 1, 1], [], []>} : vector<16x128xbf16>, vector<128x128xbf16>, vector<16x128xf32> -> vector<16x128xf32>
    %c0_14 = arith.constant 0 : index
    %c0_15 = arith.constant 0 : index
    %67 = vector.load %arg7[%c0_14, %c0_15] : memref<1x128xf32, #tpu.memory_space<vmem>>, vector<1x128xf32>
    %68 = vector.broadcast %67 : vector<1x128xf32> to vector<16x128xf32>
    %69 = arith.addf %66, %68 : vector<16x128xf32>
    %c0_16 = arith.constant 0 : index
    %c0_17 = arith.constant 0 : index
    %70 = vector.load %arg8[%c0_16, %c0_17] : memref<16x128xf32, #tpu.memory_space<vmem>>, vector<16x128xf32>
    tpu.vector_store %arg8[%c0_16, %c0_17], %69 {strides = array<i32>} : memref<16x128xf32, #tpu.memory_space<vmem>>, vector<16x128xf32>,
    return
  }
  func.func @transform_0(%arg0: i32) -> (i32, i32) {
    %c0_i32 = arith.constant 0 : i32
    %c0_i32_0 = arith.constant 0 : i32
    return %arg0, %c0_i32 : i32, i32
  }
  func.func @transform_1(%arg0: i32) -> (i32, i32) {
    %c0_i32 = arith.constant 0 : i32
    %c0_i32_0 = arith.constant 0 : i32
    %c0_i32_1 = arith.constant 0 : i32
    return %c0_i32, %c0_i32_0 : i32, i32
  }
  func.func @transform_2(%arg0: i32) -> (i32, i32) {
    %c0_i32 = arith.constant 0 : i32
    %c0_i32_0 = arith.constant 0 : i32
    %c0_i32_1 = arith.constant 0 : i32
    return %c0_i32, %c0_i32_0 : i32, i32
  }
  func.func @transform_3(%arg0: i32) -> (i32, i32) {
    %c0_i32 = arith.constant 0 : i32
    %c0_i32_0 = arith.constant 0 : i32
    %c0_i32_1 = arith.constant 0 : i32
    return %c0_i32, %c0_i32_0 : i32, i32
  }
  func.func @transform_4(%arg0: i32) -> (i32, i32) {
    %c0_i32 = arith.constant 0 : i32
    %c0_i32_0 = arith.constant 0 : i32
    %c0_i32_1 = arith.constant 0 : i32
    return %c0_i32, %c0_i32_0 : i32, i32
  }
  func.func @transform_5(%arg0: i32) -> (i32, i32) {
    %c0_i32 = arith.constant 0 : i32
    %c0_i32_0 = arith.constant 0 : i32
    %c0_i32_1 = arith.constant 0 : i32
    return %c0_i32, %c0_i32_0 : i32, i32
  }
  func.func @transform_6(%arg0: i32) -> (i32, i32) {
    %c0_i32 = arith.constant 0 : i32
    %c0_i32_0 = arith.constant 0 : i32
    %c0_i32_1 = arith.constant 0 : i32
    return %c0_i32, %c0_i32_0 : i32, i32
  }
  func.func @transform_7(%arg0: i32) -> (i32, i32) {
    %c0_i32 = arith.constant 0 : i32
    %c0_i32_0 = arith.constant 0 : i32
    return %arg0, %c0_i32 : i32, i32
  }
}

</mosaic_0001>

<bundles_post_ra>
// kernel: tpu_custom_call.1
= control target key start
LH: loop header
LB: loop body
LE: loop exit
PB: predicated region body
PF: predicated region fallthrough
CT: control target
= control target key end

     0   :  { %12 = vsyncpa [#allocation3], 0  ;;  %s663_s0 = inlined_call_operand.vmem [shape: f32[16,8], index: 0, kind: input, shape index: {}]   ;;  %s664_s1 = inlined_call_operand.vmem [shape: f32[8,128], index: 1, kind: input, shape index: {}]   ;;  %s665_s2 = inlined_call_operand.vmem [shape: f32[1,128], index: 2, kind: input, shape index: {}]   ;;  %s666_s3 = inlined_call_operand.hbm [shape: f32[128,128], index: 3, kind: input, shape index: {}]   ;;  %s667_s4 = inlined_call_operand.vmem [shape: f32[1,128], index: 4, kind: input, shape index: {}]   ;;  %s668_s5 = inlined_call_operand.hbm [shape: f32[128,128], index: 5, kind: input, shape index: {}]   ;;  %s669_s6 = inlined_call_operand.vmem [shape: f32[1,128], index: 6, kind: input, shape index: {}]   ;;  %s670_s7 = inlined_call_operand.hbm [shape: f32[16,128], index: 7, kind: output, shape index: {}]  }
   0x1   :  { %13 = vsyncpa [#allocation6], 0 }
   0x2   :  { %14 = vsyncpa [#allocation4], 0  ;;  %s527_s24 = smov [#allocation2]   ;;  %s455_s28 = scalar_lea.hbm %s666_s3, 2048 }
   0x3   :  { %s26_s25 = sshll.u32 %s527_s24, 4  ;;  %p456_p0 = scmp.ne.s32.totalorder %s666_s3, %s455_s28  ;;  %s27_s25 = int_to_ptr.vmem [resolvable:$true] %s26_s25 }
   0x4   :  { %p459_p1 = scmp.lt.u32.totalorder %s455_s28, %s666_s3 }
   0x6   :  { %p461_p2 = pnand %p459_p1, %p456_p0 }
   0x8   :  { %464 = shalt.err (!%p461_p2)
}
   0x9   :  { %s465_s10 = scalar_lea.vmem %s27_s25, 2048  ;;  %p470_p4 = scmp.lt.s32.totalorder %s27_s25, %s27_s25 }
   0xa   :  { %p466_p3 = scmp.ne.s32.totalorder %s27_s25, %s465_s10  ;;  %p471_p5 = scmp.lt.s32.totalorder %s465_s10, %s465_s10 }
   0xc   :  { %p472_p6 = por %p471_p5, %p470_p4 }
   0xe   :  { %p473_p7 = pnand %p472_p6, %p466_p3 }
  0x10   :  { %476 = shalt.err (!%p473_p7)
}
  0x11   :  { %s528_s11 = smov 128   ;;  %s529_s12 = smov 8  }
  0x12   :  { %32 = dma.hbm_to_vmem [thread:$0]  %s666_s3, 2048, %s27_s25, [#allocation3], %s528_s11, %s528_s11, %s529_s12  }
  0x13   :  { %s530_s15 = smov [#allocation5]   ;;  %s477_s19 = scalar_lea.hbm %s668_s5, 2048 }
  0x14   :  { %s40_s16 = sshll.u32 %s530_s15, 4  ;;  %p478_p8 = scmp.ne.s32.totalorder %s668_s5, %s477_s19  ;;  %s41_s16 = int_to_ptr.vmem [resolvable:$true] %s40_s16 }
  0x15   :  { %p481_p9 = scmp.lt.u32.totalorder %s477_s19, %s668_s5 }
  0x17   :  { %p483_p10 = pnand %p481_p9, %p478_p8 }
  0x19   :  { %486 = shalt.err (!%p483_p10)
}
  0x1a   :  { %s487_s24 = scalar_lea.vmem %s41_s16, 2048  ;;  %p492_p12 = scmp.lt.s32.totalorder %s41_s16, %s41_s16 }
  0x1b   :  { %p488_p11 = scmp.ne.s32.totalorder %s41_s16, %s487_s24  ;;  %p493_p13 = scmp.lt.s32.totalorder %s487_s24, %s487_s24 }
  0x1d   :  { %p494_p0 = por %p493_p13, %p492_p12 }
  0x1f   :  { %p495_p1 = pnand %p494_p0, %p488_p11 }
  0x21   :  { %498 = shalt.err (!%p495_p1)
}
  0x22   :  { %46 = dma.hbm_to_vmem [thread:$0]  %s668_s5, 2048, %s41_s16, [#allocation6], %s528_s11, %s528_s11, %s529_s12  }
  0x23   :  { %521 = dma.done.wait [#allocation3], 2048  }
  0x24   :  { %522 = vsyncadd [#allocation3], 4294965248 }
  0x25   :  { %523 = dma.done.wait [#allocation6], 2048  }
  0x26   :  { %524 = vsyncadd [#allocation6], 4294965248  ;;  %v531_v0 = vmov 1   ;;  %v532_v1 = vmov 0   ;;  %v56_v2 = vld [vmem:[%s663_s0] sm:$0xff]  ;;  %v57_v3 = vld [vmem:[%s663_s0 + $0x8] sm:$0xff]  ;;  %v69_v55 = vlaneseq }
  0x27   :  { %443 = vset.pattern.permute.xlu1 %v531_v0  ;;  %442 = vset.pattern.permute.xlu0 %v532_v1  ;;  %v533_v4 = vmov 2   ;;  %v534_v5 = vmov 3   ;;  %v535_v6 = vmov 4   ;;  %v536_v7 = vmov 5   ;;  %v199_v8 = vld [vmem:[#allocation2] sm:$0xff]  ;;  %v200_v9 = vld [vmem:[#allocation2 + $0x8] sm:$0xff] }
  0x28   :  { %76 = vperm.xlu1 %443, %v56_v2   ;;  %61 = vperm.xlu0 %442, %v56_v2   ;;  %v215_v10 = vpack.c.bf16 %v200_v9, %v199_v8  ;;  %v537_v11 = vmov 0.0   ;;  %v201_v12 = vld [vmem:[#allocation2 + $0x10] sm:$0xff]  ;;  %v202_v13 = vld [vmem:[#allocation2 + $0x18] sm:$0xff]  ;;  %v538_v14 = vmov 6   ;;  %v203_v16 = vld [vmem:[#allocation2 + $0x20] sm:$0xff]  ;;  %v539_v19 = vmov 7  }
  0x29   :  { %387 = vmatprep.subr.bf16.mxu0 %v537_v11  ;;  %407 = vmatprep.subr.bf16.mxu1 %v537_v11  ;;  %v216_v15 = vpack.c.bf16 %v202_v13, %v201_v12  ;;  %v204_v17 = vld [vmem:[#allocation2 + $0x28] sm:$0xff]  ;;  %v205_v20 = vld [vmem:[#allocation2 + $0x30] sm:$0xff]  ;;  %v206_v21 = vld [vmem:[#allocation2 + $0x38] sm:$0xff]  ;;  %vm540_vm0 = vmmov 0   ;;  %v70_v58 = vshrl.u32 %v69_v55, 7  ;;  %s541_s13 = smov [#allocation7]  }
  0x2a   :  { %388 = vmatpush3.bf16.msra.mxu0 %v215_v10  ;;  %v217_v18 = vpack.c.bf16 %v204_v17, %v203_v16  ;;  %v218_v22 = vpack.c.bf16 %v206_v21, %v205_v20  ;;  %v207_v23 = vld [vmem:[#allocation2 + $0x40] sm:$0xff]  ;;  %v208_v24 = vld [vmem:[#allocation2 + $0x48] sm:$0xff]  ;;  %v209_v26 = vld [vmem:[#allocation2 + $0x50] sm:$0xff]  ;;  %403 = vmatprep.mubr.msk.bf16.mxu0 %vm540_vm0, %v537_v11  ;;  %s353_s14 = sshll.u32 %s541_s13, 4  ;;  %s354_s14 = int_to_ptr.vmem [resolvable:$true] %s353_s14 }
  0x2b   :  { %389 = vmatprep.subr.bf16.mxu0 %v537_v11  ;;  %v219_v25 = vpack.c.bf16 %v208_v24, %v207_v23  ;;  %v210_v27 = vld [vmem:[#allocation2 + $0x58] sm:$0xff]  ;;  %v211_v29 = vld [vmem:[#allocation2 + $0x60] sm:$0xff]  ;;  %v212_v30 = vld [vmem:[#allocation2 + $0x68] sm:$0xff]  ;;  %423 = vmatprep.mubr.msk.bf16.mxu1 %vm540_vm0, %v537_v11  ;;  %v85_v61 = vsub.s32 1, %v70_v58  ;;  %v71_v62 = vsub.s32 0, %v70_v58  ;;  %v101_v0 = vsub.s32 2, %v70_v58  ;;  %p504_p3 = scmp.lt.s32.totalorder %s354_s14, %s354_s14 }
  0x2c   :  { %80 = vperm.xlu1 %443, %v57_v3   ;;  %66 = vperm.xlu0 %442, %v57_v3   ;;  %v220_v28 = vpack.c.bf16 %v210_v27, %v209_v26  ;;  %v221_v31 = vpack.c.bf16 %v212_v30, %v211_v29  ;;  %v213_v32 = vld [vmem:[#allocation2 + $0x70] sm:$0xff]  ;;  %v214_v33 = vld [vmem:[#allocation2 + $0x78] sm:$0xff]  ;;  %v274_v35 = vld [vmem:[#allocation5] sm:$0xff] }
  0x2d   :  { %v222_v34 = vpack.c.bf16 %v214_v33, %v213_v32  ;;  %v275_v36 = vld [vmem:[#allocation5 + $0x8] sm:$0xff]  ;;  %v276_v37 = vld [vmem:[#allocation5 + $0x10] sm:$0xff]  ;;  %v277_v39 = vld [vmem:[#allocation5 + $0x18] sm:$0xff] }
  0x2e   :  { %390 = vmatpush3.bf16.msra.mxu0 %v216_v15  ;;  %v290_v38 = vpack.c.bf16 %v275_v36, %v274_v35  ;;  %v291_v40 = vpack.c.bf16 %v277_v39, %v276_v37  ;;  %v278_v41 = vld [vmem:[#allocation5 + $0x20] sm:$0xff]  ;;  %v279_v42 = vld [vmem:[#allocation5 + $0x28] sm:$0xff]  ;;  %v280_v44 = vld [vmem:[#allocation5 + $0x30] sm:$0xff]  ;;  %v149_v15 = vsub.s32 5, %v70_v58 }
  0x2f   :  { %391 = vmatprep.subr.bf16.mxu0 %v537_v11  ;;  %v292_v43 = vpack.c.bf16 %v279_v42, %v278_v41  ;;  %v281_v45 = vld [vmem:[#allocation5 + $0x38] sm:$0xff]  ;;  %v282_v47 = vld [vmem:[#allocation5 + $0x40] sm:$0xff]  ;;  %v283_v48 = vld [vmem:[#allocation5 + $0x48] sm:$0xff] }
  0x30   :  { %445 = vset.pattern.permute.xlu1 %v533_v4  ;;  %444 = vset.pattern.permute.xlu0 %v533_v4  ;;  %v293_v46 = vpack.c.bf16 %v281_v45, %v280_v44  ;;  %v294_v49 = vpack.c.bf16 %v283_v48, %v282_v47  ;;  %v284_v50 = vld [vmem:[#allocation5 + $0x50] sm:$0xff]  ;;  %v285_v51 = vld [vmem:[#allocation5 + $0x58] sm:$0xff]  ;;  %v58_v63 = vld [vmem:[%s664_s1] sm:$0xff] }
  0x31   :  { %96 = vperm.xlu1 %445, %v57_v3   ;;  %92 = vperm.xlu0 %444, %v56_v2   ;;  %v295_v52 = vpack.c.bf16 %v285_v51, %v284_v50  ;;  %v86_v1 = vrot.slane %v58_v63, %v85_v61  ;;  %v150_v26 = vrot.slane %v58_v63, %v149_v15  ;;  %v366_v51 = vld [vmem:[%s665_s2] ss:$0 sm:$0xff] }
  0x32   :  { %392 = vmatpush3.bf16.msra.mxu0 %v217_v18  ;;  %408 = vmatpush3.bf16.msra.mxu1 %v290_v38  ;;  %v286_v61 = vld [vmem:[#allocation5 + $0x60] sm:$0xff] }
  0x33   :  { %393 = vmatprep.subr.bf16.mxu0 %v537_v11  ;;  %409 = vmatprep.subr.bf16.mxu1 %v537_v11 }
  0x35   :  { %446 = vset.pattern.permute.xlu1 %v534_v5  ;;  %447 = vset.pattern.permute.xlu0 %v534_v5 }
  0x36   :  { %108 = vperm.xlu1 %446, %v56_v2   ;;  %112 = vperm.xlu0 %447, %v57_v3  }
  0x37   :  { %394 = vmatpush3.bf16.msra.mxu0 %v218_v22  ;;  %410 = vmatpush3.bf16.msra.mxu1 %v291_v40  ;;  %v165_v22 = vsub.s32 6, %v70_v58 }
  0x38   :  { %395 = vmatprep.subr.bf16.mxu0 %v537_v11  ;;  %411 = vmatprep.subr.bf16.mxu1 %v537_v11 }
  0x39   :  { %v166_v32 = vrot.slane %v58_v63, %v165_v22 }
  0x3a   :  { %448 = vset.pattern.permute.xlu1 %v535_v6  ;;  %449 = vset.pattern.permute.xlu0 %v536_v7  ;;  %v102_v6 = vrot.slane %v58_v63, %v101_v0  ;;  %v288_v0 = vld [vmem:[#allocation5 + $0x70] sm:$0xff] }
  0x3b   :  { %124 = vperm.xlu1 %448, %v56_v2   ;;  %140 = vperm.xlu0 %449, %v56_v2  }
  0x3c   :  { %396 = vmatpush3.bf16.msra.mxu0 %v219_v25  ;;  %412 = vmatpush3.bf16.msra.mxu1 %v292_v43 }
  0x3d   :  { %397 = vmatprep.subr.bf16.mxu0 %v537_v11  ;;  %413 = vmatprep.subr.bf16.mxu1 %v537_v11 }
  0x3f   :  { %128 = vperm.xlu1 %448, %v57_v3   ;;  %452 = vset.pattern.permute.xlu0 %v538_v14 }
  0x40   :  { %160 = vperm.xlu0 %452, %v57_v3   ;;  %398 = vmatpush3.bf16.msra.mxu0 %v220_v28 }
  0x41   :  { %399 = vmatprep.subr.bf16.mxu0 %v537_v11  ;;  %414 = vmatpush3.bf16.msra.mxu1 %v293_v46 }
  0x42   :  { %415 = vmatprep.subr.bf16.mxu1 %v537_v11 }
  0x43   :  { %450 = vset.pattern.permute.xlu1 %v536_v7  ;;  %v133_v7 = vsub.s32 4, %v70_v58 }
  0x44   :  { %144 = vperm.xlu1 %450, %v57_v3   ;;  %454 = vset.pattern.permute.xlu0 %v539_v19 }
  0x45   :  { %400 = vmatpush3.bf16.msra.mxu0 %v221_v31  ;;  %416 = vmatpush3.bf16.msra.mxu1 %v294_v49  ;;  %v181_v31 = vsub.s32 7, %v70_v58 }
  0x46   :  { %401 = vmatprep.subr.bf16.mxu0 %v537_v11  ;;  %417 = vmatprep.subr.bf16.mxu1 %v537_v11 }
  0x47   :  { %v182_v41 = vrot.slane %v58_v63, %v181_v31 }
  0x48   :  { %451 = vset.pattern.permute.xlu1 %v538_v14  ;;  %v134_v14 = vrot.slane %v58_v63, %v133_v7 }
  0x49   :  { %156 = vperm.xlu1 %451, %v56_v2   ;;  %402 = vmatpush3.bf16.msra.mxu0 %v222_v34 }
  0x4a   :  { %418 = vmatpush3.bf16.msra.mxu1 %v295_v52 }
  0x4b   :  { %419 = vmatprep.subr.bf16.mxu1 %v537_v11 }
  0x4d   :  { %453 = vset.pattern.permute.xlu1 %v539_v19 }
  0x4e   :  { %172 = vperm.xlu1 %453, %v56_v2   ;;  %v72_v2 = vrot.slane %v58_v63, %v71_v62  ;;  %v287_v62 = vld [vmem:[#allocation5 + $0x68] sm:$0xff] }
  0x52   :  { %176 = vperm.xlu1 %453, %v57_v3   ;;  %v117_v3 = vsub.s32 3, %v70_v58 }
  0x54   :  { %v118_v10 = vrot.slane %v58_v63, %v117_v3  ;;  %v296_v63 = vpack.c.bf16 %v287_v62, %v286_v61  ;;  %v367_v3 = vld [vmem:[%s667_s4] ss:$0 sm:$0xff]  ;;  %s499_s4 = scalar_lea.vmem %s354_s14, 256 }
  0x55   :  { %p500_p2 = scmp.ne.s32.totalorder %s354_s14, %s499_s4  ;;  %p505_p4 = scmp.lt.s32.totalorder %s499_s4, %s499_s4 }
  0x56   :  { %420 = vmatpush3.bf16.msra.mxu1 %v296_v63 }
  0x57   :  { %421 = vmatprep.subr.bf16.mxu1 %v537_v11  ;;  %v368_v11 = vld [vmem:[%s669_s6] ss:$0 sm:$0xff]  ;;  %p506_p5 = por %p505_p4, %p504_p3 }
  0x59   :  { %p507_p6 = pnand %p506_p5, %p500_p2 }
  0xa7   :  { %v77_v53 = vpop.permute.xlu1 %76  ;;  %v62_v56 = vpop.permute.xlu0 %61 }
  0xa8   :  { %v87_v8 = vmul.f32 %v86_v1, %v77_v53  ;;  %v73_v9 = vmul.f32 %v72_v2, %v62_v56 }
  0xaa   :  { %v89_v17 = vadd.f32 %v87_v8, %v73_v9 }
  0xab   :  { %v81_v54 = vpop.permute.xlu1 %80  ;;  %v67_v59 = vpop.permute.xlu0 %66 }
  0xac   :  { %v88_v18 = vmul.f32 %v86_v1, %v81_v54  ;;  %v74_v19 = vmul.f32 %v72_v2, %v67_v59  ;;  %v289_v1 = vld [vmem:[#allocation5 + $0x78] sm:$0xff] }
  0xad   :  { %v297_v2 = vpack.c.bf16 %v289_v1, %v288_v0 }
  0xae   :  { %v90_v28 = vadd.f32 %v88_v18, %v74_v19 }
  0xaf   :  { %422 = vmatpush3.bf16.msra.mxu1 %v297_v2 }
  0xb0   :  { %v97_v57 = vpop.permute.xlu1 %96  ;;  %v93_v5 = vpop.permute.xlu0 %92 }
  0xb1   :  { %v103_v13 = vmul.f32 %v102_v6, %v93_v5  ;;  %v104_v23 = vmul.f32 %v102_v6, %v97_v57 }
  0xb3   :  { %v105_v24 = vadd.f32 %v103_v13, %v89_v17  ;;  %v106_v33 = vadd.f32 %v104_v23, %v90_v28 }
  0xb5   :  { %v109_v60 = vpop.permute.xlu1 %108  ;;  %v113_v16 = vpop.permute.xlu0 %112 }
  0xb6   :  { %v119_v20 = vmul.f32 %v118_v10, %v109_v60  ;;  %v120_v30 = vmul.f32 %v118_v10, %v113_v16 }
  0xb8   :  { %v121_v29 = vadd.f32 %v119_v20, %v105_v24  ;;  %v122_v38 = vadd.f32 %v120_v30, %v106_v33 }
  0xba   :  { %v125_v4 = vpop.permute.xlu1 %124  ;;  %v141_v27 = vpop.permute.xlu0 %140 }
  0xbb   :  { %v135_v25 = vmul.f32 %v134_v14, %v125_v4  ;;  %v151_v35 = vmul.f32 %v150_v26, %v141_v27 }
  0xbd   :  { %v137_v34 = vadd.f32 %v135_v25, %v121_v29 }
  0xbe   :  { %v129_v12 = vpop.permute.xlu1 %128 }
  0xbf   :  { %v136_v36 = vmul.f32 %v134_v14, %v129_v12  ;;  %v161_v42 = vpop.permute.xlu0 %160  ;;  %v153_v43 = vadd.f32 %v151_v35, %v137_v34 }
  0xc0   :  { %v168_v47 = vmul.f32 %v166_v32, %v161_v42 }
  0xc1   :  { %v138_v44 = vadd.f32 %v136_v36, %v122_v38 }
  0xc3   :  { %v145_v21 = vpop.permute.xlu1 %144 }
  0xc4   :  { %v152_v39 = vmul.f32 %v150_v26, %v145_v21 }
  0xc6   :  { %v154_v46 = vadd.f32 %v152_v39, %v138_v44 }
  0xc8   :  { %v157_v37 = vpop.permute.xlu1 %156  ;;  %v170_v53 = vadd.f32 %v168_v47, %v154_v46 }
  0xc9   :  { %v167_v40 = vmul.f32 %v166_v32, %v157_v37 }
  0xcb   :  { %v169_v48 = vadd.f32 %v167_v40, %v153_v43 }
  0xcd   :  { %v173_v45 = vpop.permute.xlu1 %172 }
  0xce   :  { %v183_v49 = vmul.f32 %v182_v41, %v173_v45 }
  0xd0   :  { %v185_v50 = vadd.f32 %v183_v49, %v169_v48 }
  0xd1   :  { %v177_v52 = vpop.permute.xlu1 %176 }
  0xd2   :  { %v184_v54 = vmul.f32 %v182_v41, %v177_v52  ;;  %v194_v55 = vadd.f32 %v366_v51, %v185_v50 }
  0xd4   :  { %v186_v56 = vadd.f32 %v184_v54, %v170_v53  ;;  %v196_v58 = vmax.f32 %v194_v55, 0.0 }
  0xd6   :  { %v195_v57 = vadd.f32 %v366_v51, %v186_v56 }
  0xd8   :  { %v197_v59 = vmax.f32 %v195_v57, 0.0 }
  0xda   :  { %v198_v60 = vpack.c.bf16 %v197_v59, %v196_v58 }
  0xdc   :  { %404 = vmatmul.mubr.bf16.vlgmr.msra.gmra.mrb[0].mxu0 %v198_v60 }
 0x1af   :  { %v264_v4 = vpop.f32.mrb[0].mxu0 }
 0x1b0   :  { %v265_v5 = vadd.f32 %v367_v3, %v264_v4  ;;  %v405_v6 = vpop.f32.mrb[1].mxu0 }
 0x1b1   :  { %v267_v7 = vpop.f32.mrb[2].mxu0 }
 0x1b2   :  { %v268_v8 = vadd.f32 %v367_v3, %v267_v7  ;;  %v406_v9 = vpop.f32.mrb[3].mxu0  ;;  %v271_v10 = vmax.f32 %v265_v5, 0.0 }
 0x1b4   :  { %v272_v12 = vmax.f32 %v268_v8, 0.0 }
 0x1b6   :  { %v273_v13 = vpack.c.bf16 %v272_v12, %v271_v10 }
 0x1b8   :  { %424 = vmatmul.mubr.bf16.vlgmr.msra.gmra.mrb[0].mxu1 %v273_v13 }
 0x28b   :  { %v339_v14 = vpop.f32.mrb[0].mxu1 }
 0x28c   :  { %v340_v15 = vadd.f32 %v368_v11, %v339_v14  ;;  %v425_v16 = vpop.f32.mrb[1].mxu1 }
 0x28d   :  { %v342_v17 = vpop.f32.mrb[2].mxu1 }
 0x28e   :  { %346 = vst [vmem:[#allocation7] sm:$0xff] %v340_v15  ;;  %v343_v18 = vadd.f32 %v368_v11, %v342_v17  ;;  %v426_v19 = vpop.f32.mrb[3].mxu1 }
 0x290   :  { %347 = vst [vmem:[#allocation7 + $0x8] sm:$0xff] %v343_v18 }
 0x291   :  { %510 = shalt.err (!%p507_p6)
}
 0x292   :  { %s511_s16 = scalar_lea.hbm %s670_s7, 256 }
 0x293   :  { %p512_p7 = scmp.ne.s32.totalorder %s670_s7, %s511_s16  ;;  %p515_p8 = scmp.lt.u32.totalorder %s511_s16, %s670_s7 }
 0x295   :  { %p517_p9 = pnand %p515_p8, %p512_p7 }
 0x297   :  { %520 = shalt.err (!%p517_p9)
}
 0x298   :  { %359 = dma.vmem_to_hbm [thread:$0]  %s354_s14, 256, %s670_s7, [#allocation4], %s528_s11, %s528_s11, %s529_s12  }
 0x299   :  { %525 = dma.done.wait [#allocation4], 256  }
 0x29a   :  { %526 = vsyncadd [#allocation4], 4294967040 }
 0x29b   :  { %363 = vsyncpa [#allocation3], 1 }
 0x29c   :  { %364 = vsyncpa [#allocation6], 1 }
 0x29d   :  { %365 = vsyncpa [#allocation4], 1 }

</bundles_post_ra>
